<compile_context>
chip_gen: v7x
topology: tpu7x:2x2x1
jax: 0.10.0
libtpu: 0.0.40
codegen_flags: <defaults>
</compile_context>

<pallas_src>
import functools

import jax
import jax.numpy as jnp
from jax import lax
from jax.experimental import pallas as pl
from jax.experimental.pallas import tpu as pltpu

INPUT_SIZE = 2
HIDDEN_SIZE = 10
OUTPUT_SIZE = 2


def _round_up(n, m):
    return ((n + m - 1) // m) * m


def mlp_kernel(x_ref, w1_ref, b1_ref, w2_ref, b2_ref, w3_ref, b3_ref, o_ref, *, chunk):
    # Tiny weights: load once per grid step (blocks are VMEM-resident across steps).
    w1 = w1_ref[...]
    b1 = b1_ref[...]
    w2 = w2_ref[...]
    b2 = b2_ref[...]
    w3 = w3_ref[...]
    b3 = b3_ref[...]

    tile = x_ref.shape[-1]
    n_chunks = tile // chunk  # static: tile is chosen as a multiple of chunk

    def dense(w, b, a):
        # [out, in] @ [in, C] -> [out, C] via unrolled VPU broadcast-FMAs
        # (in = 2 or 10, so the MXU is skipped on purpose).
        out_f, in_f = w.shape
        acc = w[:, 0:1] * a[0:1, :]
        for k in range(1, in_f):
            acc = acc + w[:, k:k + 1] * a[k:k + 1, :]
        return acc + b

    def body(c, carry):
        start = pl.multiple_of(c * chunk, 128)
        x = x_ref[:, pl.ds(start, chunk)]                       # [2,  C]
        h1 = jnp.maximum(dense(w1, b1, x), 0.0)                 # [10, C]
        h2 = jnp.maximum(dense(w2, b2, h1), 0.0)                # [10, C]
        logits = dense(w3, b3, h2)                              # [2,  C]

        # 2-class log_softmax along the class (sublane) axis, single exp + log1p (EUP).
        l0 = logits[0:1, :]
        l1 = logits[1:2, :]
        m = jnp.maximum(l0, l1)
        lse = m + jnp.log1p(jnp.exp(-jnp.abs(l1 - l0)))         # [1, C]
        o_ref[:, pl.ds(start, chunk)] = (logits - lse).astype(o_ref.dtype)
        return carry

    lax.fori_loop(0, n_chunks, body, 0, unroll=min(2, n_chunks))


def net_forward(x, params, *, tile_b=32768):
    """x: [B, INPUT_SIZE] float32 -> [B, OUTPUT_SIZE] float32 log-probabilities."""
    w1, b1, w2, b2, w3, b3 = params
    B = x.shape[0]

    # Lane-dense [features, batch] layout (cheap 2-row XLA transpose; no zero-pad /
    # full re-materialization -- the ragged last block is masked by Pallas).
    xt = x.astype(jnp.float32).T                                # [2, B]

    # Tile selection: big tiles amortize per-step overhead, capped at ~half the
    # 128-rounded batch so the "parallel" axis spans both TensorCores on v7x.
    Bp = _round_up(B, 128)
    half = _round_up(pl.cdiv(Bp, 2), 128)
    tile_b = max(128, min(_round_up(tile_b, 128), half))
    # Inner lane-chunk (<=512 columns) that divides tile_b, to bound live ranges.
    chunk = next(c for c in (512, 384, 256, 128) if tile_b % c == 0)

    grid = (pl.cdiv(B, tile_b),)                                # ragged last block OK

    def resident(shape):
        # Full block + constant index -> stays VMEM-resident across grid steps.
        return pl.BlockSpec(shape, lambda i: (0, 0))

    weight_bytes = sum(int(a.size) * a.dtype.itemsize for a in params)
    cost = pl.CostEstimate(
        flops=2 * B * (INPUT_SIZE * HIDDEN_SIZE
                       + HIDDEN_SIZE * HIDDEN_SIZE
                       + HIDDEN_SIZE * OUTPUT_SIZE),
        transcendentals=2 * B,
        bytes_accessed=4 * B * (INPUT_SIZE + OUTPUT_SIZE) + weight_bytes,
    )

    out_t = pl.pallas_call(
        functools.partial(mlp_kernel, chunk=chunk),
        out_shape=jax.ShapeDtypeStruct((OUTPUT_SIZE, B), jnp.float32),
        grid=grid,
        in_specs=[
            pl.BlockSpec((INPUT_SIZE, tile_b), lambda i: (0, i)),   # x tile
            resident(w1.shape), resident(b1.shape),
            resident(w2.shape), resident(b2.shape),
            resident(w3.shape), resident(b3.shape),
        ],
        out_specs=pl.BlockSpec((OUTPUT_SIZE, tile_b), lambda i: (0, i)),
        compiler_params=pltpu.CompilerParams(
            dimension_semantics=("parallel",),      # megacore sharding on v7x
        ),
        cost_estimate=cost,
    )(xt, w1, b1, w2, b2, w3, b3)

    return out_t.T                                              # [B, OUTPUT_SIZE]


def init_params(key):
    """PyTorch-default init U(-1/sqrt(fan_in), 1/sqrt(fan_in)).
    Weights kept in PyTorch layout [out, in]; biases as [out, 1]."""
    def linear_init(k, fan_in, fan_out):
        kw, kb = jax.random.split(k)
        bound = 1.0 / jnp.sqrt(float(fan_in))
        w = jax.random.uniform(kw, (fan_out, fan_in), jnp.float32, -bound, bound)
        b = jax.random.uniform(kb, (fan_out, 1), jnp.float32, -bound, bound)
        return w, b

    k1, k2, k3 = jax.random.split(key, 3)
    w1, b1 = linear_init(k1, INPUT_SIZE, HIDDEN_SIZE)
    w2, b2 = linear_init(k2, HIDDEN_SIZE, HIDDEN_SIZE)
    w3, b3 = linear_init(k3, HIDDEN_SIZE, OUTPUT_SIZE)
    return (w1, b1, w2, b2, w3, b3)


def ref_forward(x, params):
    w1, b1, w2, b2, w3, b3 = params
    h1 = jnp.maximum(x @ w1.T + b1[:, 0], 0.0)
    h2 = jnp.maximum(h1 @ w2.T + b2[:, 0], 0.0)
    logits = h2 @ w3.T + b3[:, 0]
    return jax.nn.log_softmax(logits, axis=1)


if __name__ == "__main__":
    key = jax.random.PRNGKey(0)
    kp, kx1, kx2 = jax.random.split(key, 3)
    params = init_params(kp)

    # Small example consistent with the module: batch=8, 2 input features.
    x_small = jax.random.normal(kx1, (8, INPUT_SIZE), jnp.float32)
    out_small = jax.block_until_ready(net_forward(x_small, params))
    assert jnp.allclose(out_small, ref_forward(x_small, params), atol=1e-5, rtol=1e-5), \
        "kernel mismatch vs reference (small batch)"

    # Exercises: 2-step "parallel" grid, ragged last block, and the inner chunk loop.
    x_big = jax.random.normal(kx2, (1300, INPUT_SIZE), jnp.float32)
    out_big = jax.block_until_ready(net_forward(x_big, params))
    assert jnp.allclose(out_big, ref_forward(x_big, params), atol=1e-5, rtol=1e-5), \
        "kernel mismatch vs reference (multi-tile / ragged batch)"

    print("KERNEL_OK")
</pallas_src>

<mosaic_0001>
module attributes {stable_mosaic.version = 11 : i64} {
  func.func @mlp_kernel(%arg0: i32, %arg1: memref<2x128xf32, #tpu.memory_space<vmem>>, %arg2: memref<10x2xf32, #tpu.memory_space<vmem>>, %arg3: memref<10x1xf32, #tpu.memory_space<vmem>>, %arg4: memref<10x10xf32, #tpu.memory_space<vmem>>, %arg5: memref<10x1xf32, #tpu.memory_space<vmem>>, %arg6: memref<2x10xf32, #tpu.memory_space<vmem>>, %arg7: memref<2x1xf32, #tpu.memory_space<vmem>>, %arg8: memref<2x128xf32, #tpu.memory_space<vmem>>) attributes {dimension_semantics = [#tpu.dimension_semantics<parallel>], iteration_bounds = array<i64: 1>, scalar_prefetch = 0 : i64, scratch_operands = 0 : i64, tpu.core_type = #tpu.core_type<tc>, window_params = [{transform_indices = @transform_0, window_bounds = array<i64: 2, 128>}, {pipeline_mode = #tpu.pipeline_mode<synchronous>, transform_indices = @transform_1, window_bounds = array<i64: 10, 2>}, {pipeline_mode = #tpu.pipeline_mode<synchronous>, transform_indices = @transform_2, window_bounds = array<i64: 10, 1>}, {pipeline_mode = #tpu.pipeline_mode<synchronous>, transform_indices = @transform_3, window_bounds = array<i64: 10, 10>}, {pipeline_mode = #tpu.pipeline_mode<synchronous>, transform_indices = @transform_4, window_bounds = array<i64: 10, 1>}, {pipeline_mode = #tpu.pipeline_mode<synchronous>, transform_indices = @transform_5, window_bounds = array<i64: 2, 10>}, {pipeline_mode = #tpu.pipeline_mode<synchronous>, transform_indices = @transform_6, window_bounds = array<i64: 2, 1>}, {transform_indices = @transform_7, window_bounds = array<i64: 2, 128>}]} {
    %c0 = arith.constant 0 : index
    %c0_0 = arith.constant 0 : index
    %0 = vector.load %arg2[%c0, %c0_0] : memref<10x2xf32, #tpu.memory_space<vmem>>, vector<10x2xf32>
    %c0_1 = arith.constant 0 : index
    %c0_2 = arith.constant 0 : index
    %1 = vector.load %arg3[%c0_1, %c0_2] : memref<10x1xf32, #tpu.memory_space<vmem>>, vector<10x1xf32>
    %c0_3 = arith.constant 0 : index
    %c0_4 = arith.constant 0 : index
    %2 = vector.load %arg4[%c0_3, %c0_4] : memref<10x10xf32, #tpu.memory_space<vmem>>, vector<10x10xf32>
    %c0_5 = arith.constant 0 : index
    %c0_6 = arith.constant 0 : index
    %3 = vector.load %arg5[%c0_5, %c0_6] : memref<10x1xf32, #tpu.memory_space<vmem>>, vector<10x1xf32>
    %c0_7 = arith.constant 0 : index
    %c0_8 = arith.constant 0 : index
    %4 = vector.load %arg6[%c0_7, %c0_8] : memref<2x10xf32, #tpu.memory_space<vmem>>, vector<2x10xf32>
    %c0_9 = arith.constant 0 : index
    %c0_10 = arith.constant 0 : index
    %5 = vector.load %arg7[%c0_9, %c0_10] : memref<2x1xf32, #tpu.memory_space<vmem>>, vector<2x1xf32>
    %c0_i32 = arith.constant 0 : i32
    %c128_i32 = arith.constant 128 : i32
    %6 = arith.muli %c0_i32, %c128_i32 : i32
    %7 = tpu.assume_multiple %6, 128 : i32
    %c0_11 = arith.constant 0 : index
    %8 = arith.index_cast %7 : i32 to index
    %9 = vector.load %arg1[%c0_11, %8] : memref<2x128xf32, #tpu.memory_space<vmem>>, vector<2x128xf32>
    %10 = vector.extract_strided_slice %0 {offsets = [0, 0], sizes = [10, 1], strides = [1, 1]} : vector<10x2xf32> to vector<10x1xf32>
    %11 = vector.extract_strided_slice %9 {offsets = [0, 0], sizes = [1, 128], strides = [1, 1]} : vector<2x128xf32> to vector<1x128xf32>
    %12 = vector.broadcast %10 : vector<10x1xf32> to vector<10x128xf32>
    %13 = vector.broadcast %11 : vector<1x128xf32> to vector<10x128xf32>
    %14 = arith.mulf %12, %13 : vector<10x128xf32>
    %15 = vector.extract_strided_slice %0 {offsets = [0, 1], sizes = [10, 1], strides = [1, 1]} : vector<10x2xf32> to vector<10x1xf32>
    %16 = vector.extract_strided_slice %9 {offsets = [1, 0], sizes = [1, 128], strides = [1, 1]} : vector<2x128xf32> to vector<1x128xf32>
    %17 = vector.broadcast %15 : vector<10x1xf32> to vector<10x128xf32>
    %18 = vector.broadcast %16 : vector<1x128xf32> to vector<10x128xf32>
    %19 = arith.mulf %17, %18 : vector<10x128xf32>
    %20 = arith.addf %14, %19 : vector<10x128xf32>
    %21 = vector.broadcast %1 : vector<10x1xf32> to vector<10x128xf32>
    %22 = arith.addf %20, %21 : vector<10x128xf32>
    %cst = arith.constant 0.000000e+00 : f32
    %23 = vector.broadcast %cst : f32 to vector<10x128xf32>
    %24 = arith.maximumf %22, %23 : vector<10x128xf32>
    %25 = vector.extract_strided_slice %2 {offsets = [0, 0], sizes = [10, 1], strides = [1, 1]} : vector<10x10xf32> to vector<10x1xf32>
    %26 = vector.extract_strided_slice %24 {offsets = [0, 0], sizes = [1, 128], strides = [1, 1]} : vector<10x128xf32> to vector<1x128xf32>
    %27 = vector.broadcast %25 : vector<10x1xf32> to vector<10x128xf32>
    %28 = vector.broadcast %26 : vector<1x128xf32> to vector<10x128xf32>
    %29 = arith.mulf %27, %28 : vector<10x128xf32>
    %30 = vector.extract_strided_slice %2 {offsets = [0, 1], sizes = [10, 1], strides = [1, 1]} : vector<10x10xf32> to vector<10x1xf32>
    %31 = vector.extract_strided_slice %24 {offsets = [1, 0], sizes = [1, 128], strides = [1, 1]} : vector<10x128xf32> to vector<1x128xf32>
    %32 = vector.broadcast %30 : vector<10x1xf32> to vector<10x128xf32>
    %33 = vector.broadcast %31 : vector<1x128xf32> to vector<10x128xf32>
    %34 = arith.mulf %32, %33 : vector<10x128xf32>
    %35 = arith.addf %29, %34 : vector<10x128xf32>
    %36 = vector.extract_strided_slice %2 {offsets = [0, 2], sizes = [10, 1], strides = [1, 1]} : vector<10x10xf32> to vector<10x1xf32>
    %37 = vector.extract_strided_slice %24 {offsets = [2, 0], sizes = [1, 128], strides = [1, 1]} : vector<10x128xf32> to vector<1x128xf32>
    %38 = vector.broadcast %36 : vector<10x1xf32> to vector<10x128xf32>
    %39 = vector.broadcast %37 : vector<1x128xf32> to vector<10x128xf32>
    %40 = arith.mulf %38, %39 : vector<10x128xf32>
    %41 = arith.addf %35, %40 : vector<10x128xf32>
    %42 = vector.extract_strided_slice %2 {offsets = [0, 3], sizes = [10, 1], strides = [1, 1]} : vector<10x10xf32> to vector<10x1xf32>
    %43 = vector.extract_strided_slice %24 {offsets = [3, 0], sizes = [1, 128], strides = [1, 1]} : vector<10x128xf32> to vector<1x128xf32>
    %44 = vector.broadcast %42 : vector<10x1xf32> to vector<10x128xf32>
    %45 = vector.broadcast %43 : vector<1x128xf32> to vector<10x128xf32>
    %46 = arith.mulf %44, %45 : vector<10x128xf32>
    %47 = arith.addf %41, %46 : vector<10x128xf32>
    %48 = vector.extract_strided_slice %2 {offsets = [0, 4], sizes = [10, 1], strides = [1, 1]} : vector<10x10xf32> to vector<10x1xf32>
    %49 = vector.extract_strided_slice %24 {offsets = [4, 0], sizes = [1, 128], strides = [1, 1]} : vector<10x128xf32> to vector<1x128xf32>
    %50 = vector.broadcast %48 : vector<10x1xf32> to vector<10x128xf32>
    %51 = vector.broadcast %49 : vector<1x128xf32> to vector<10x128xf32>
    %52 = arith.mulf %50, %51 : vector<10x128xf32>
    %53 = arith.addf %47, %52 : vector<10x128xf32>
    %54 = vector.extract_strided_slice %2 {offsets = [0, 5], sizes = [10, 1], strides = [1, 1]} : vector<10x10xf32> to vector<10x1xf32>
    %55 = vector.extract_strided_slice %24 {offsets = [5, 0], sizes = [1, 128], strides = [1, 1]} : vector<10x128xf32> to vector<1x128xf32>
    %56 = vector.broadcast %54 : vector<10x1xf32> to vector<10x128xf32>
    %57 = vector.broadcast %55 : vector<1x128xf32> to vector<10x128xf32>
    %58 = arith.mulf %56, %57 : vector<10x128xf32>
    %59 = arith.addf %53, %58 : vector<10x128xf32>
    %60 = vector.extract_strided_slice %2 {offsets = [0, 6], sizes = [10, 1], strides = [1, 1]} : vector<10x10xf32> to vector<10x1xf32>
    %61 = vector.extract_strided_slice %24 {offsets = [6, 0], sizes = [1, 128], strides = [1, 1]} : vector<10x128xf32> to vector<1x128xf32>
    %62 = vector.broadcast %60 : vector<10x1xf32> to vector<10x128xf32>
    %63 = vector.broadcast %61 : vector<1x128xf32> to vector<10x128xf32>
    %64 = arith.mulf %62, %63 : vector<10x128xf32>
    %65 = arith.addf %59, %64 : vector<10x128xf32>
    %66 = vector.extract_strided_slice %2 {offsets = [0, 7], sizes = [10, 1], strides = [1, 1]} : vector<10x10xf32> to vector<10x1xf32>
    %67 = vector.extract_strided_slice %24 {offsets = [7, 0], sizes = [1, 128], strides = [1, 1]} : vector<10x128xf32> to vector<1x128xf32>
    %68 = vector.broadcast %66 : vector<10x1xf32> to vector<10x128xf32>
    %69 = vector.broadcast %67 : vector<1x128xf32> to vector<10x128xf32>
    %70 = arith.mulf %68, %69 : vector<10x128xf32>
    %71 = arith.addf %65, %70 : vector<10x128xf32>
    %72 = vector.extract_strided_slice %2 {offsets = [0, 8], sizes = [10, 1], strides = [1, 1]} : vector<10x10xf32> to vector<10x1xf32>
    %73 = vector.extract_strided_slice %24 {offsets = [8, 0], sizes = [1, 128], strides = [1, 1]} : vector<10x128xf32> to vector<1x128xf32>
    %74 = vector.broadcast %72 : vector<10x1xf32> to vector<10x128xf32>
    %75 = vector.broadcast %73 : vector<1x128xf32> to vector<10x128xf32>
    %76 = arith.mulf %74, %75 : vector<10x128xf32>
    %77 = arith.addf %71, %76 : vector<10x128xf32>
    %78 = vector.extract_strided_slice %2 {offsets = [0, 9], sizes = [10, 1], strides = [1, 1]} : vector<10x10xf32> to vector<10x1xf32>
    %79 = vector.extract_strided_slice %24 {offsets = [9, 0], sizes = [1, 128], strides = [1, 1]} : vector<10x128xf32> to vector<1x128xf32>
    %80 = vector.broadcast %78 : vector<10x1xf32> to vector<10x128xf32>
    %81 = vector.broadcast %79 : vector<1x128xf32> to vector<10x128xf32>
    %82 = arith.mulf %80, %81 : vector<10x128xf32>
    %83 = arith.addf %77, %82 : vector<10x128xf32>
    %84 = vector.broadcast %3 : vector<10x1xf32> to vector<10x128xf32>
    %85 = arith.addf %83, %84 : vector<10x128xf32>
    %cst_12 = arith.constant 0.000000e+00 : f32
    %86 = vector.broadcast %cst_12 : f32 to vector<10x128xf32>
    %87 = arith.maximumf %85, %86 : vector<10x128xf32>
    %88 = vector.extract_strided_slice %4 {offsets = [0, 0], sizes = [2, 1], strides = [1, 1]} : vector<2x10xf32> to vector<2x1xf32>
    %89 = vector.extract_strided_slice %87 {offsets = [0, 0], sizes = [1, 128], strides = [1, 1]} : vector<10x128xf32> to vector<1x128xf32>
    %90 = vector.broadcast %88 : vector<2x1xf32> to vector<2x128xf32>
    %91 = vector.broadcast %89 : vector<1x128xf32> to vector<2x128xf32>
    %92 = arith.mulf %90, %91 : vector<2x128xf32>
    %93 = vector.extract_strided_slice %4 {offsets = [0, 1], sizes = [2, 1], strides = [1, 1]} : vector<2x10xf32> to vector<2x1xf32>
    %94 = vector.extract_strided_slice %87 {offsets = [1, 0], sizes = [1, 128], strides = [1, 1]} : vector<10x128xf32> to vector<1x128xf32>
    %95 = vector.broadcast %93 : vector<2x1xf32> to vector<2x128xf32>
    %96 = vector.broadcast %94 : vector<1x128xf32> to vector<2x128xf32>
    %97 = arith.mulf %95, %96 : vector<2x128xf32>
    %98 = arith.addf %92, %97 : vector<2x128xf32>
    %99 = vector.extract_strided_slice %4 {offsets = [0, 2], sizes = [2, 1], strides = [1, 1]} : vector<2x10xf32> to vector<2x1xf32>
    %100 = vector.extract_strided_slice %87 {offsets = [2, 0], sizes = [1, 128], strides = [1, 1]} : vector<10x128xf32> to vector<1x128xf32>
    %101 = vector.broadcast %99 : vector<2x1xf32> to vector<2x128xf32>
    %102 = vector.broadcast %100 : vector<1x128xf32> to vector<2x128xf32>
    %103 = arith.mulf %101, %102 : vector<2x128xf32>
    %104 = arith.addf %98, %103 : vector<2x128xf32>
    %105 = vector.extract_strided_slice %4 {offsets = [0, 3], sizes = [2, 1], strides = [1, 1]} : vector<2x10xf32> to vector<2x1xf32>
    %106 = vector.extract_strided_slice %87 {offsets = [3, 0], sizes = [1, 128], strides = [1, 1]} : vector<10x128xf32> to vector<1x128xf32>
    %107 = vector.broadcast %105 : vector<2x1xf32> to vector<2x128xf32>
    %108 = vector.broadcast %106 : vector<1x128xf32> to vector<2x128xf32>
    %109 = arith.mulf %107, %108 : vector<2x128xf32>
    %110 = arith.addf %104, %109 : vector<2x128xf32>
    %111 = vector.extract_strided_slice %4 {offsets = [0, 4], sizes = [2, 1], strides = [1, 1]} : vector<2x10xf32> to vector<2x1xf32>
    %112 = vector.extract_strided_slice %87 {offsets = [4, 0], sizes = [1, 128], strides = [1, 1]} : vector<10x128xf32> to vector<1x128xf32>
    %113 = vector.broadcast %111 : vector<2x1xf32> to vector<2x128xf32>
    %114 = vector.broadcast %112 : vector<1x128xf32> to vector<2x128xf32>
    %115 = arith.mulf %113, %114 : vector<2x128xf32>
    %116 = arith.addf %110, %115 : vector<2x128xf32>
    %117 = vector.extract_strided_slice %4 {offsets = [0, 5], sizes = [2, 1], strides = [1, 1]} : vector<2x10xf32> to vector<2x1xf32>
    %118 = vector.extract_strided_slice %87 {offsets = [5, 0], sizes = [1, 128], strides = [1, 1]} : vector<10x128xf32> to vector<1x128xf32>
    %119 = vector.broadcast %117 : vector<2x1xf32> to vector<2x128xf32>
    %120 = vector.broadcast %118 : vector<1x128xf32> to vector<2x128xf32>
    %121 = arith.mulf %119, %120 : vector<2x128xf32>
    %122 = arith.addf %116, %121 : vector<2x128xf32>
    %123 = vector.extract_strided_slice %4 {offsets = [0, 6], sizes = [2, 1], strides = [1, 1]} : vector<2x10xf32> to vector<2x1xf32>
    %124 = vector.extract_strided_slice %87 {offsets = [6, 0], sizes = [1, 128], strides = [1, 1]} : vector<10x128xf32> to vector<1x128xf32>
    %125 = vector.broadcast %123 : vector<2x1xf32> to vector<2x128xf32>
    %126 = vector.broadcast %124 : vector<1x128xf32> to vector<2x128xf32>
    %127 = arith.mulf %125, %126 : vector<2x128xf32>
    %128 = arith.addf %122, %127 : vector<2x128xf32>
    %129 = vector.extract_strided_slice %4 {offsets = [0, 7], sizes = [2, 1], strides = [1, 1]} : vector<2x10xf32> to vector<2x1xf32>
    %130 = vector.extract_strided_slice %87 {offsets = [7, 0], sizes = [1, 128], strides = [1, 1]} : vector<10x128xf32> to vector<1x128xf32>
    %131 = vector.broadcast %129 : vector<2x1xf32> to vector<2x128xf32>
    %132 = vector.broadcast %130 : vector<1x128xf32> to vector<2x128xf32>
    %133 = arith.mulf %131, %132 : vector<2x128xf32>
    %134 = arith.addf %128, %133 : vector<2x128xf32>
    %135 = vector.extract_strided_slice %4 {offsets = [0, 8], sizes = [2, 1], strides = [1, 1]} : vector<2x10xf32> to vector<2x1xf32>
    %136 = vector.extract_strided_slice %87 {offsets = [8, 0], sizes = [1, 128], strides = [1, 1]} : vector<10x128xf32> to vector<1x128xf32>
    %137 = vector.broadcast %135 : vector<2x1xf32> to vector<2x128xf32>
    %138 = vector.broadcast %136 : vector<1x128xf32> to vector<2x128xf32>
    %139 = arith.mulf %137, %138 : vector<2x128xf32>
    %140 = arith.addf %134, %139 : vector<2x128xf32>
    %141 = vector.extract_strided_slice %4 {offsets = [0, 9], sizes = [2, 1], strides = [1, 1]} : vector<2x10xf32> to vector<2x1xf32>
    %142 = vector.extract_strided_slice %87 {offsets = [9, 0], sizes = [1, 128], strides = [1, 1]} : vector<10x128xf32> to vector<1x128xf32>
    %143 = vector.broadcast %141 : vector<2x1xf32> to vector<2x128xf32>
    %144 = vector.broadcast %142 : vector<1x128xf32> to vector<2x128xf32>
    %145 = arith.mulf %143, %144 : vector<2x128xf32>
    %146 = arith.addf %140, %145 : vector<2x128xf32>
    %147 = vector.broadcast %5 : vector<2x1xf32> to vector<2x128xf32>
    %148 = arith.addf %146, %147 : vector<2x128xf32>
    %149 = vector.extract_strided_slice %148 {offsets = [0, 0], sizes = [1, 128], strides = [1, 1]} : vector<2x128xf32> to vector<1x128xf32>
    %150 = vector.extract_strided_slice %148 {offsets = [1, 0], sizes = [1, 128], strides = [1, 1]} : vector<2x128xf32> to vector<1x128xf32>
    %151 = arith.maximumf %149, %150 : vector<1x128xf32>
    %152 = arith.subf %150, %149 : vector<1x128xf32>
    %153 = math.absf %152 : vector<1x128xf32>
    %cst_13 = arith.constant 0.000000e+00 : f32
    %154 = vector.broadcast %cst_13 : f32 to vector<1x128xf32>
    %155 = arith.subf %154, %153 : vector<1x128xf32>
    %156 = math.exp %155 : vector<1x128xf32>
    %157 = math.log1p %156 : vector<1x128xf32>
    %158 = arith.addf %151, %157 : vector<1x128xf32>
    %159 = vector.broadcast %158 : vector<1x128xf32> to vector<2x128xf32>
    %160 = arith.subf %148, %159 : vector<2x128xf32>
    %c0_14 = arith.constant 0 : index
    %161 = arith.index_cast %7 : i32 to index
    %162 = vector.load %arg8[%c0_14, %161] : memref<2x128xf32, #tpu.memory_space<vmem>>, vector<2x128xf32>
    tpu.vector_store %arg8[%c0_14, %161], %160 {strides = array<i32>} : memref<2x128xf32, #tpu.memory_space<vmem>>, vector<2x128xf32>,
    %c1_i32 = arith.constant 1 : i32
    return
  }
  func.func @transform_0(%arg0: i32) -> (i32, i32) {
    %c0_i32 = arith.constant 0 : i32
    %c0_i32_0 = arith.constant 0 : i32
    return %c0_i32, %arg0 : i32, i32
  }
  func.func @transform_1(%arg0: i32) -> (i32, i32) {
    %c0_i32 = arith.constant 0 : i32
    %c0_i32_0 = arith.constant 0 : i32
    %c0_i32_1 = arith.constant 0 : i32
    return %c0_i32, %c0_i32_0 : i32, i32
  }
  func.func @transform_2(%arg0: i32) -> (i32, i32) {
    %c0_i32 = arith.constant 0 : i32
    %c0_i32_0 = arith.constant 0 : i32
    %c0_i32_1 = arith.constant 0 : i32
    return %c0_i32, %c0_i32_0 : i32, i32
  }
  func.func @transform_3(%arg0: i32) -> (i32, i32) {
    %c0_i32 = arith.constant 0 : i32
    %c0_i32_0 = arith.constant 0 : i32
    %c0_i32_1 = arith.constant 0 : i32
    return %c0_i32, %c0_i32_0 : i32, i32
  }
  func.func @transform_4(%arg0: i32) -> (i32, i32) {
    %c0_i32 = arith.constant 0 : i32
    %c0_i32_0 = arith.constant 0 : i32
    %c0_i32_1 = arith.constant 0 : i32
    return %c0_i32, %c0_i32_0 : i32, i32
  }
  func.func @transform_5(%arg0: i32) -> (i32, i32) {
    %c0_i32 = arith.constant 0 : i32
    %c0_i32_0 = arith.constant 0 : i32
    %c0_i32_1 = arith.constant 0 : i32
    return %c0_i32, %c0_i32_0 : i32, i32
  }
  func.func @transform_6(%arg0: i32) -> (i32, i32) {
    %c0_i32 = arith.constant 0 : i32
    %c0_i32_0 = arith.constant 0 : i32
    %c0_i32_1 = arith.constant 0 : i32
    return %c0_i32, %c0_i32_0 : i32, i32
  }
  func.func @transform_7(%arg0: i32) -> (i32, i32) {
    %c0_i32 = arith.constant 0 : i32
    %c0_i32_0 = arith.constant 0 : i32
    return %c0_i32, %arg0 : i32, i32
  }
}

</mosaic_0001>

<bundles_post_ra>
// kernel: tpu_custom_call.1
= control target key start
LH: loop header
LB: loop body
LE: loop exit
PB: predicated region body
PF: predicated region fallthrough
CT: control target
= control target key end

     0   :  { %v483_v2 = vmov 1   ;;  %v484_v3 = vmov 0   ;;  %s642_s0 = inlined_call_operand.vmem [shape: f32[2,8], index: 0, kind: input, shape index: {}]   ;;  %s643_s1 = inlined_call_operand.vmem [shape: f32[10,2], index: 1, kind: input, shape index: {}]   ;;  %s644_s2 = inlined_call_operand.vmem [shape: f32[10,1], index: 2, kind: input, shape index: {}]   ;;  %s645_s3 = inlined_call_operand.vmem [shape: f32[10,10], index: 3, kind: input, shape index: {}]   ;;  %s646_s4 = inlined_call_operand.vmem [shape: f32[10,1], index: 4, kind: input, shape index: {}]   ;;  %s647_s5 = inlined_call_operand.vmem [shape: f32[2,10], index: 5, kind: input, shape index: {}]   ;;  %s648_s6 = inlined_call_operand.vmem [shape: f32[2,1], index: 6, kind: input, shape index: {}]   ;;  %s649_s7 = inlined_call_operand.hbm [shape: f32[2,8], index: 7, kind: output, shape index: {}]  }
   0x1   :  { %v29_v0 = vld [vmem:[%s644_s2] sm:$0xff]  ;;  %419 = vset.pattern.permute.xlu0 %v483_v2  ;;  %420 = vset.pattern.permute.xlu1 %v484_v3 }
   0x2   :  { %v27_v1 = vld [vmem:[%s643_s1] sm:$0xff]  ;;  %72 = vperm.xlu1 %420, %v29_v0  }
   0x3   :  { %55 = vperm.xlu0 %419, %v27_v1   ;;  %v31_v4 = vld [vmem:[%s645_s3] sm:$0xff] }
   0x4   :  { %12 = vsyncpa [#allocation3], 0  ;;  %v485_v5 = vmov 3   ;;  %v486_v6 = vmov 5   ;;  %v28_v7 = vld [vmem:[%s643_s1 + $0x8] sm:$0x3]  ;;  %v48_v26 = vlaneseq }
   0x5   :  { %v32_v8 = vld [vmem:[%s645_s3 + $0x8] sm:$0x3]  ;;  %v487_v9 = vmov 4   ;;  %v488_v10 = vmov 2   ;;  %v489_v12 = vmov 6   ;;  %v490_v13 = vmov 7  }
   0x6   :  { %86 = vperm.xlu1 %420, %v31_v4   ;;  %v30_v11 = vld [vmem:[%s644_s2 + $0x8] sm:$0x3]  ;;  %v35_v14 = vld [vmem:[%s647_s5] sm:$0x3]  ;;  %v491_v15 = vmov 9   ;;  %v492_v16 = vmov 8  }
   0x7   :  { %424 = vset.pattern.permute.xlu0 %v485_v5  ;;  %v34_v17 = vld [vmem:[%s646_s4 + $0x8] sm:$0x3]  ;;  %v36_v18 = vld [vmem:[%s648_s6] sm:$0x3]  ;;  %v578_v28 = vshrl.u32 %v48_v26, 7 }
   0x8   :  { %133 = vperm.xlu0 %424, %v31_v4   ;;  %v33_v19 = vld [vmem:[%s646_s4] sm:$0xff] }
   0x9   :  { %v581_v31 = vsub.s32 1, %v578_v28  ;;  %v584_v32 = vsub.s32 0, %v578_v28  ;;  %v37_v33 = vld [vmem:[%s642_s0] sm:$0x3]  ;;  %v126_v50 = vsub.s32 2, %v578_v28  ;;  %v142_v55 = vsub.s32 3, %v578_v28 }
   0xa   :  { %421 = vset.pattern.permute.xlu1 %v483_v2  ;;  %v158_v59 = vsub.s32 4, %v578_v28  ;;  %s493_s0 = smov [#allocation2]  }
   0xb   :  { %101 = vperm.xlu1 %421, %v31_v4   ;;  %v65_v35 = vrot.slane %v37_v33, %v581_v31  ;;  %v51_v36 = vrot.slane %v37_v33, %v584_v32  ;;  %s400_s17 = sshll.u32 %s493_s0, 4  ;;  %s401_s17 = int_to_ptr.vmem [resolvable:$true] %s400_s17 }
   0xc   :  { %427 = vset.pattern.permute.xlu0 %v486_v6  ;;  %s459_s18 = scalar_lea.vmem %s401_s17, 32  ;;  %p464_p1 = scmp.lt.s32.totalorder %s401_s17, %s401_s17 }
   0xd   :  { %165 = vperm.xlu0 %427, %v31_v4   ;;  %p460_p0 = scmp.ne.s32.totalorder %s401_s17, %s459_s18  ;;  %p465_p2 = scmp.lt.s32.totalorder %s459_s18, %s459_s18 }
   0xf   :  { %422 = vset.pattern.permute.xlu1 %v484_v3  ;;  %p466_p3 = por %p465_p2, %p464_p1 }
  0x10   :  { %45 = vperm.xlu1 %422, %v28_v7  }
  0x11   :  { %428 = vset.pattern.permute.xlu0 %v484_v3  ;;  %p467_p4 = pnand %p466_p3, %p460_p0 }
  0x12   :  { %40 = vperm.xlu0 %428, %v27_v1  }
  0x14   :  { %423 = vset.pattern.permute.xlu1 %v483_v2 }
  0x15   :  { %59 = vperm.xlu1 %423, %v28_v7  }
  0x16   :  { %91 = vperm.xlu0 %428, %v32_v8  }
  0x19   :  { %425 = vset.pattern.permute.xlu1 %v487_v9 }
  0x1a   :  { %431 = vset.pattern.permute.xlu0 %v488_v10  ;;  %149 = vperm.xlu1 %425, %v31_v4  }
  0x1b   :  { %117 = vperm.xlu0 %431, %v31_v4  }
  0x1e   :  { %426 = vset.pattern.permute.xlu1 %v484_v3 }
  0x1f   :  { %121 = vperm.xlu0 %431, %v32_v8   ;;  %77 = vperm.xlu1 %426, %v30_v11  }
  0x23   :  { %436 = vset.pattern.permute.xlu0 %v487_v9  ;;  %429 = vset.pattern.permute.xlu1 %v489_v12 }
  0x24   :  { %153 = vperm.xlu0 %436, %v32_v8   ;;  %181 = vperm.xlu1 %429, %v31_v4  }
  0x28   :  { %439 = vset.pattern.permute.xlu0 %v489_v12  ;;  %430 = vset.pattern.permute.xlu1 %v490_v13 }
  0x29   :  { %185 = vperm.xlu0 %439, %v32_v8   ;;  %197 = vperm.xlu1 %430, %v31_v4  }
  0x2d   :  { %442 = vset.pattern.permute.xlu0 %v483_v2  ;;  %432 = vset.pattern.permute.xlu1 %v483_v2 }
  0x2e   :  { %269 = vperm.xlu0 %442, %v35_v14   ;;  %105 = vperm.xlu1 %432, %v32_v8  }
  0x32   :  { %445 = vset.pattern.permute.xlu0 %v491_v15  ;;  %433 = vset.pattern.permute.xlu1 %v492_v16 }
  0x33   :  { %233 = vperm.xlu0 %445, %v32_v8   ;;  %213 = vperm.xlu1 %433, %v31_v4  }
  0x37   :  { %448 = vset.pattern.permute.xlu0 %v484_v3  ;;  %434 = vset.pattern.permute.xlu1 %v491_v15 }
  0x38   :  { %251 = vperm.xlu0 %448, %v34_v17   ;;  %229 = vperm.xlu1 %434, %v31_v4  }
  0x3c   :  { %451 = vset.pattern.permute.xlu0 %v490_v13  ;;  %435 = vset.pattern.permute.xlu1 %v485_v5 }
  0x3d   :  { %329 = vperm.xlu0 %451, %v35_v14   ;;  %137 = vperm.xlu1 %435, %v32_v8  }
  0x41   :  { %454 = vset.pattern.permute.xlu0 %v484_v3  ;;  %437 = vset.pattern.permute.xlu1 %v484_v3 }
  0x42   :  { %360 = vperm.xlu0 %454, %v36_v18   ;;  %246 = vperm.xlu1 %437, %v33_v19  }
  0x46   :  { %438 = vset.pattern.permute.xlu1 %v486_v6 }
  0x47   :  { %169 = vperm.xlu1 %438, %v32_v8  }
  0x4b   :  { %440 = vset.pattern.permute.xlu1 %v490_v13  ;;  %v206_v13 = vsub.s32 7, %v578_v28 }
  0x4c   :  { %201 = vperm.xlu1 %440, %v32_v8  }
  0x50   :  { %441 = vset.pattern.permute.xlu1 %v484_v3  ;;  %v174_v3 = vsub.s32 5, %v578_v28 }
  0x51   :  { %260 = vperm.xlu1 %441, %v35_v14  }
  0x55   :  { %443 = vset.pattern.permute.xlu1 %v492_v16 }
  0x56   :  { %217 = vperm.xlu1 %443, %v32_v8  }
  0x5a   :  { %444 = vset.pattern.permute.xlu1 %v488_v10  ;;  %v190_v10 = vsub.s32 6, %v578_v28 }
  0x5b   :  { %279 = vperm.xlu1 %444, %v35_v14  }
  0x5f   :  { %446 = vset.pattern.permute.xlu1 %v485_v5 }
  0x60   :  { %289 = vperm.xlu1 %446, %v35_v14  }
  0x64   :  { %447 = vset.pattern.permute.xlu1 %v487_v9 }
  0x65   :  { %299 = vperm.xlu1 %447, %v35_v14  }
  0x69   :  { %449 = vset.pattern.permute.xlu1 %v486_v6 }
  0x6a   :  { %309 = vperm.xlu1 %449, %v35_v14  }
  0x6e   :  { %450 = vset.pattern.permute.xlu1 %v489_v12 }
  0x6f   :  { %319 = vperm.xlu1 %450, %v35_v14  }
  0x73   :  { %452 = vset.pattern.permute.xlu1 %v492_v16 }
  0x74   :  { %339 = vperm.xlu1 %452, %v35_v14  }
  0x78   :  { %453 = vset.pattern.permute.xlu1 %v491_v15 }
  0x79   :  { %349 = vperm.xlu1 %453, %v35_v14  }
  0x81   :  { %v73_v20 = vpop.permute.xlu1 %72 }
  0x82   :  { %v56_v24 = vpop.permute.xlu0 %55 }
  0x83   :  { %v66_v39 = vmul.f32 %v65_v35, %v56_v24 }
  0x85   :  { %v87_v21 = vpop.permute.xlu1 %86 }
  0x87   :  { %v134_v27 = vpop.permute.xlu0 %133 }
  0x8a   :  { %v102_v22 = vpop.permute.xlu1 %101 }
  0x8c   :  { %v166_v30 = vpop.permute.xlu0 %165 }
  0x8f   :  { %v46_v23 = vpop.permute.xlu1 %45 }
  0x90   :  { %v53_v1 = vmul.f32 %v51_v36, %v46_v23 }
  0x91   :  { %v41_v37 = vpop.permute.xlu0 %40 }
  0x92   :  { %v52_v40 = vmul.f32 %v51_v36, %v41_v37 }
  0x94   :  { %v60_v25 = vpop.permute.xlu1 %59  ;;  %v68_v42 = vadd.f32 %v66_v39, %v52_v40 }
  0x95   :  { %v92_v49 = vpop.permute.xlu0 %91  ;;  %v67_v62 = vmul.f32 %v65_v35, %v60_v25 }
  0x96   :  { %v80_v43 = vadd.f32 %v73_v20, %v68_v42 }
  0x97   :  { %v69_v5 = vadd.f32 %v67_v62, %v53_v1 }
  0x98   :  { %v82_v45 = vmax.f32 %v80_v43, 0.0 }
  0x99   :  { %v150_v29 = vpop.permute.xlu1 %149 }
  0x9a   :  { %v97_v47 = vrot.slane %v82_v45, %v584_v32  ;;  %v111_v48 = vrot.slane %v82_v45, %v581_v31  ;;  %v127_v54 = vrot.slane %v82_v45, %v126_v50  ;;  %v118_v56 = vpop.permute.xlu0 %117  ;;  %v143_v61 = vrot.slane %v82_v45, %v142_v55 }
  0x9b   :  { %v159_v2 = vrot.slane %v82_v45, %v158_v59  ;;  %v175_v11 = vrot.slane %v82_v45, %v174_v3  ;;  %v191_v18 = vrot.slane %v82_v45, %v190_v10  ;;  %v207_v23 = vrot.slane %v82_v45, %v206_v13 }
  0x9c   :  { %v98_v52 = vmul.f32 %v97_v47, %v87_v21  ;;  %v112_v53 = vmul.f32 %v111_v48, %v102_v22  ;;  %v128_v60 = vmul.f32 %v127_v54, %v118_v56  ;;  %v144_v4 = vmul.f32 %v143_v61, %v134_v27 }
  0x9d   :  { %v160_v8 = vmul.f32 %v159_v2, %v150_v29  ;;  %v99_v15 = vmul.f32 %v97_v47, %v92_v49  ;;  %v176_v17 = vmul.f32 %v175_v11, %v166_v30 }
  0x9e   :  { %v78_v34 = vpop.permute.xlu1 %77  ;;  %v114_v58 = vadd.f32 %v112_v53, %v98_v52  ;;  %v122_v20 = vpop.permute.xlu0 %121 }
  0x9f   :  { %v81_v9 = vadd.f32 %v78_v34, %v69_v5  ;;  %v129_v25 = vmul.f32 %v127_v54, %v122_v20 }
  0xa0   :  { %v130_v63 = vadd.f32 %v128_v60, %v114_v58 }
  0xa1   :  { %v83_v16 = vmax.f32 %v81_v9, 0.0 }
  0xa2   :  { %v146_v6 = vadd.f32 %v144_v4, %v130_v63 }
  0xa3   :  { %v182_v38 = vpop.permute.xlu1 %181  ;;  %v223_v27 = vrot.slane %v83_v16, %v584_v32  ;;  %v239_v30 = vrot.slane %v83_v16, %v581_v31  ;;  %v154_v37 = vpop.permute.xlu0 %153 }
  0xa4   :  { %v162_v12 = vadd.f32 %v160_v8, %v146_v6  ;;  %v192_v22 = vmul.f32 %v191_v18, %v182_v38  ;;  %v161_v38 = vmul.f32 %v159_v2, %v154_v37 }
  0xa6   :  { %v178_v21 = vadd.f32 %v176_v17, %v162_v12 }
  0xa8   :  { %v198_v41 = vpop.permute.xlu1 %197  ;;  %v194_v34 = vadd.f32 %v192_v22, %v178_v21 }
  0xa9   :  { %v208_v26 = vmul.f32 %v207_v23, %v198_v41  ;;  %v186_v41 = vpop.permute.xlu0 %185 }
  0xaa   :  { %v193_v54 = vmul.f32 %v191_v18, %v186_v41 }
  0xab   :  { %v210_v39 = vadd.f32 %v208_v26, %v194_v34 }
  0xad   :  { %v106_v44 = vpop.permute.xlu1 %105  ;;  %v270_v56 = vpop.permute.xlu0 %269 }
  0xae   :  { %v113_v14 = vmul.f32 %v111_v48, %v106_v44 }
  0xb0   :  { %v115_v24 = vadd.f32 %v113_v14, %v99_v15 }
  0xb2   :  { %v214_v46 = vpop.permute.xlu1 %213  ;;  %v131_v36 = vadd.f32 %v129_v25, %v115_v24  ;;  %v234_v1 = vpop.permute.xlu0 %233 }
  0xb3   :  { %v224_v35 = vmul.f32 %v223_v27, %v214_v46  ;;  %v241_v6 = vmul.f32 %v239_v30, %v234_v1 }
  0xb5   :  { %v226_v43 = vadd.f32 %v224_v35, %v210_v39 }
  0xb7   :  { %v230_v51 = vpop.permute.xlu1 %229 }
  0xb8   :  { %v240_v40 = vmul.f32 %v239_v30, %v230_v51 }
  0xba   :  { %v242_v47 = vadd.f32 %v240_v40, %v226_v43 }
  0xbc   :  { %v138_v57 = vpop.permute.xlu1 %137 }
  0xbd   :  { %v145_v29 = vmul.f32 %v143_v61, %v138_v57 }
  0xbf   :  { %v147_v42 = vadd.f32 %v145_v29, %v131_v36 }
  0xc1   :  { %v247_v0 = vpop.permute.xlu1 %246  ;;  %v163_v48 = vadd.f32 %v161_v38, %v147_v42 }
  0xc2   :  { %v254_v49 = vadd.f32 %v247_v0, %v242_v47 }
  0xc4   :  { %v256_v57 = vmax.f32 %v254_v49, 0.0 }
  0xc6   :  { %v170_v7 = vpop.permute.xlu1 %169  ;;  %v266_v51 = vrot.slane %v256_v57, %v584_v32  ;;  %v275_v63 = vrot.slane %v256_v57, %v581_v31  ;;  %v285_v0 = vrot.slane %v256_v57, %v126_v50  ;;  %v295_v9 = vrot.slane %v256_v57, %v142_v55  ;;  %v252_v50 = vpop.permute.xlu0 %251 }
  0xc7   :  { %v177_v44 = vmul.f32 %v175_v11, %v170_v7  ;;  %v305_v15 = vrot.slane %v256_v57, %v158_v59  ;;  %v325_v55 = vrot.slane %v256_v57, %v190_v10  ;;  %v335_v25 = vrot.slane %v256_v57, %v206_v13 }
  0xc8   :  { %v276_v7 = vmul.f32 %v275_v63, %v270_v56 }
  0xc9   :  { %v179_v52 = vadd.f32 %v177_v44, %v163_v48 }
  0xca   :  { %v330_v29 = vpop.permute.xlu0 %329 }
  0xcb   :  { %v202_v19 = vpop.permute.xlu1 %201  ;;  %v195_v58 = vadd.f32 %v193_v54, %v179_v52  ;;  %v336_v34 = vmul.f32 %v335_v25, %v330_v29 }
  0xcc   :  { %v209_v46 = vmul.f32 %v207_v23, %v202_v19  ;;  %v315_v19 = vrot.slane %v256_v57, %v174_v3 }
  0xce   :  { %v211_v62 = vadd.f32 %v209_v46, %v195_v58  ;;  %v361_v42 = vpop.permute.xlu0 %360 }
  0xd0   :  { %v261_v33 = vpop.permute.xlu1 %260 }
  0xd1   :  { %v267_v2 = vmul.f32 %v266_v51, %v261_v33 }
  0xd3   :  { %v277_v11 = vadd.f32 %v276_v7, %v267_v2 }
  0xd5   :  { %v218_v45 = vpop.permute.xlu1 %217 }
  0xd6   :  { %v225_v60 = vmul.f32 %v223_v27, %v218_v45 }
  0xd8   :  { %v227_v4 = vadd.f32 %v225_v60, %v211_v62 }
  0xda   :  { %v280_v53 = vpop.permute.xlu1 %279  ;;  %v243_v12 = vadd.f32 %v241_v6, %v227_v4 }
  0xdb   :  { %v286_v8 = vmul.f32 %v285_v0, %v280_v53 }
  0xdc   :  { %v255_v22 = vadd.f32 %v252_v50, %v243_v12 }
  0xdd   :  { %v287_v16 = vadd.f32 %v286_v8, %v277_v11 }
  0xde   :  { %v257_v27 = vmax.f32 %v255_v22, 0.0 }
  0xdf   :  { %v290_v61 = vpop.permute.xlu1 %289 }
  0xe0   :  { %v296_v14 = vmul.f32 %v295_v9, %v290_v61  ;;  %v345_v3 = vrot.slane %v257_v27, %v584_v32  ;;  %v355_v37 = vrot.slane %v257_v27, %v581_v31 }
  0xe2   :  { %v297_v20 = vadd.f32 %v296_v14, %v287_v16 }
  0xe4   :  { %v300_v5 = vpop.permute.xlu1 %299 }
  0xe5   :  { %v306_v17 = vmul.f32 %v305_v15, %v300_v5 }
  0xe7   :  { %v307_v23 = vadd.f32 %v306_v17, %v297_v20 }
  0xe9   :  { %v310_v18 = vpop.permute.xlu1 %309 }
  0xea   :  { %v316_v21 = vmul.f32 %v315_v19, %v310_v18 }
  0xec   :  { %v317_v26 = vadd.f32 %v316_v21, %v307_v23 }
  0xee   :  { %v320_v24 = vpop.permute.xlu1 %319 }
  0xef   :  { %v326_v59 = vmul.f32 %v325_v55, %v320_v24 }
  0xf1   :  { %v327_v33 = vadd.f32 %v326_v59, %v317_v26 }
  0xf3   :  { %v340_v30 = vpop.permute.xlu1 %339  ;;  %v337_v35 = vadd.f32 %v336_v34, %v327_v33 }
  0xf4   :  { %v346_v36 = vmul.f32 %v345_v3, %v340_v30 }
  0xf6   :  { %v347_v40 = vadd.f32 %v346_v36, %v337_v35 }
  0xf8   :  { %v350_v39 = vpop.permute.xlu1 %349 }
  0xf9   :  { %v356_v10 = vmul.f32 %v355_v37, %v350_v39 }
  0xfb   :  { %v357_v38 = vadd.f32 %v356_v10, %v347_v40 }
  0xfd   :  { %v363_v28 = vadd.f32 %v361_v42, %v357_v38 }
  0xff   :  { %v368_v13 = vrot.slane %v363_v28, 7  ;;  %v365_v31 = vrot.slane %v363_v28, 1 }
 0x101   :  { %v370_v43 = vsub.f32 %v363_v28, %v368_v13  ;;  %v367_v46 = vmax.f32 %v363_v28, %v365_v31 }
 0x103   :  { %v371_v44 = vand.u32 2147483647, %v370_v43 }
 0x105   :  { %v372_v45 = vsub.f32 0.0, %v371_v44 }
 0x107   :  { %v373_v47 = vmul.f32 1.442695, %v372_v45 }
 0x109   :  { %455 = vpow2.f32 %v373_v47 }
 0x113   :  { %v456_v48 = vpop.eup %455 }
 0x114   :  { %v375_v41 = vadd.f32 1.0, %v456_v48  ;;  %v378_v49 = vmul.f32 -0.5, %v456_v48  ;;  %v381_v53 = vand.u32 2147483647, %v456_v48 }
 0x116   :  { %457 = vlog2.f32 %v375_v41  ;;  %v379_v52 = vadd.f32 1.0, %v378_v49  ;;  %vm382_vm0 = vcmp.lt.f32.partialorder %v381_v53, 0.0004427343 }
 0x118   :  { %v380_v57 = vmul.f32 %v456_v48, %v379_v52 }
 0x120   :  { %v458_v54 = vpop.eup %457 }
 0x121   :  { %v377_v56 = vmul.f32 0.6931472, %v458_v54 }
 0x123   :  { %v383_v58 = vsel %vm382_vm0, %v380_v57, %v377_v56 }
 0x124   :  { %v385_v60 = vrot.slane %v383_v58, 1 }
 0x126   :  { %v387_v61 = vadd.f32 %v385_v60, %v367_v46 }
 0x128   :  { %v391_v62 = vrot.slane %v387_v61, %v584_v32 }
 0x12a   :  { %v392_v51 = vsub.f32 %v363_v28, %v391_v62 }
 0x12c   :  { %393 = vst [vmem:[#allocation2] sm:$0x3] %v392_v51 }
 0x12d   :  { %470 = shalt.err (!%p467_p4)
}
 0x12e   :  { %s471_s21 = scalar_lea.hbm %s649_s7, 32 }
 0x12f   :  { %p472_p5 = scmp.ne.s32.totalorder %s649_s7, %s471_s21  ;;  %p475_p6 = scmp.lt.u32.totalorder %s471_s21, %s649_s7 }
 0x131   :  { %p477_p7 = pnand %p475_p6, %p472_p5 }
 0x133   :  { %480 = shalt.err (!%p477_p7)
}
 0x134   :  { %403 = dma.vmem_to_hbm [thread:$0]  %s401_s17, 32, %s649_s7, [#allocation3]  }
 0x135   :  { %481 = dma.done.wait [#allocation3], 32  }
 0x136   :  { %482 = vsyncadd [#allocation3], 4294967264 }
 0x137   :  { %407 = vsyncpa [#allocation3], 1 }

</bundles_post_ra>
